<compile_context>
chip_gen: v6e
topology: v6e:2x2x1
jax: 0.10.0
libtpu: 0.0.40
codegen_flags: <defaults>
</compile_context>

<pallas_src>
import jax
import jax.numpy as jnp
from jax.experimental import pallas as pl
from jax.experimental.pallas import tpu as pltpu


# ----------------------------- kernels -------------------------------------


def _encoder_kernel_mxu(x_ref, w_ref, out_ref):
    """Wide-W path (W > 4).

    x_ref:   [B, W, TILE_L]  batch-major tap stack (f32)
    w_ref:   [N, W]          conv filters (f32, resident)
    out_ref: [B, N, TILE_L]  output block, already in final NCL layout
    """
    w = w_ref[...]                                   # hoisted: one weight read per step
    for b in range(x_ref.shape[0]):                  # static unroll over small B
        # K=W reduction on the MXU (vector-extended slot); VPU only does the ReLU.
        acc = jnp.dot(w, x_ref[b], preferred_element_type=jnp.float32)   # [N, TILE_L] f32
        out_ref[b] = jnp.maximum(acc, 0.0).astype(out_ref.dtype)         # fused ReLU + cast


def _encoder_kernel_vpu(x_ref, w_ref, out_ref):
    """Small-W path (W <= 4): W unrolled VPU broadcast FMAs (~2W+1 VALU ops/elem,
    well under the HBM roofline at this W).

    x_ref:   [B, W, TILE_L]  batch-major tap stack (f32)
    w_ref:   [W, N, 1]       conv filters, tap-major (f32, resident)
    out_ref: [B, N, TILE_L]  output block
    """
    W = x_ref.shape[1]
    wt = w_ref[...]                                  # hoisted: single weight read
    acc = wt[0][None, :, :] * x_ref[:, 0, :][:, None, :]               # [B, N, TILE_L] f32
    for k in range(1, W):                            # static unroll (W <= 4)
        acc = acc + wt[k][None, :, :] * x_ref[:, k, :][:, None, :]
    # f32 accumulator throughout; cast (possibly to bf16) only at the final store.
    out_ref[...] = jnp.maximum(acc, 0.0).astype(out_ref.dtype)


# ----------------------------- tile planning --------------------------------


def _round_up(x, m):
    return ((x + m - 1) // m) * m


def _vmem_capacity_bytes():
    try:
        return int(pltpu.get_tpu_info().vmem_capacity_bytes)
    except Exception:
        return 64 * 1024 * 1024          # conservative fallback (v7x per-TC VMEM)


def _multi_core():
    """True when the 'parallel' grid axis spans >1 TensorCore (v7x dual-TC,
    v4/v5p megacore). Single-TC 'lite' parts (v5e/v6e) return False."""
    try:
        kind = jax.devices()[0].device_kind.lower()
    except Exception:
        return True                      # unknown -> split; costs at most one extra step
    return not any(t in kind for t in ("lite", "v5e", "v6e"))


def _plan_tiles(B, N, W, L, out_itemsize):
    """Pick (tile_l, grid_l, vmem_limit_bytes) for the L (frame) grid axis."""
    phys = _vmem_capacity_bytes()
    # Generation-aware scratch budget: ~28.8 MiB on v7x (64 MiB physical),
    # 32 MiB on v5e/v6e (128 MiB physical) -- headroom left for compiler scratch.
    budget = min(int(phys * 0.45), 32 * 1024 * 1024)

    in_row = B * _round_up(W, 8) * 4                 # f32 tap bytes per frame (sublane-padded)
    out_row = B * _round_up(N, 16) * out_itemsize    # output bytes per frame
    w_bytes = 2 * _round_up(N, 8) * 128 * 4          # resident weight (tiny, double-buffered)

    if L <= 128:
        tile_l, grid_l = L, 1
    else:
        L128 = _round_up(L, 128)
        # Largest VMEM-feasible tile; if even 128 frames overflow the budget we
        # still use 128 and rely on the raised vmem_limit below.
        max_tile = max(128, ((budget // (2 * (in_row + out_row))) // 128) * 128)
        # Per-step output-byte target (~8 MiB) so per-step overhead is negligible.
        target = _round_up(pl.cdiv(8 * 1024 * 1024, B * N * out_itemsize), 128)
        tile_l = max(128, min(max_tile, target, L128))
        grid_l = pl.cdiv(L128, tile_l)
        if _multi_core():
            grid_l = max(grid_l, 2)      # keep both TensorCores busy (v7x / megacore)
        # Balance: equal-sized multiple-of-128 tiles across the grid steps.
        tile_l = min(tile_l, _round_up(pl.cdiv(L128, grid_l), 128))
        grid_l = pl.cdiv(L, tile_l)
        if grid_l == 1:
            tile_l = L                   # single full-extent block, no frame padding

    # Double-buffered working set (inputs + outputs + weight), lane-padded.
    ws = 2 * _round_up(tile_l, 128) * (in_row + out_row) + w_bytes
    vmem_limit = int(min(int(phys * 0.9), max(ws + (6 << 20), 20 << 20)))
    return tile_l, grid_l, vmem_limit


# ----------------------------- wrapper --------------------------------------


def encoder_forward(mixture, conv_weight, W=2, out_dtype=jnp.bfloat16):
    """mixture: [B, T]; conv_weight: [N, 1, W] -> ReLU(Conv1d(stride=W//2)) as [B, N, L].

    out_dtype defaults to bfloat16 (halves the dominant HBM writeback; the
    accumulation is always f32).  Pass jnp.float32 for exact PyTorch parity.
    """
    B, T = mixture.shape
    N = conv_weight.shape[0]
    assert W >= 2 and T >= W, "Encoder requires W >= 2 and T >= W"
    stride = W // 2
    L = (T - W) // stride + 1

    out_itemsize = jnp.dtype(out_dtype).itemsize
    tile_l, grid_l, vmem_limit = _plan_tiles(B, N, W, L, out_itemsize)
    L_pad = grid_l * tile_l

    mixture = mixture.astype(jnp.float32)
    # Pad the (small) raw signal so every tap view has L_pad frames; frames past
    # L are masked by the standard Pallas partial-block output stores.
    T_need = (L_pad - 1) * stride + W
    if T_need > T:
        mixture = jnp.pad(mixture, ((0, 0), (0, T_need - T)))

    # Lane-dense, batch-major tap stack: taps[b, k, l] = mixture[b, l*stride + k]
    taps = jnp.stack([mixture[:, k::stride][:, :L_pad] for k in range(W)], axis=1)  # [B, W, L_pad]
    w2d = conv_weight.reshape(N, W).astype(jnp.float32)                             # [N, W]

    if W <= 4:
        kernel = _encoder_kernel_vpu
        w_arg = jnp.transpose(w2d)[:, :, None]                                      # [W, N, 1]
        w_spec = pl.BlockSpec((W, N, 1), lambda i: (0, 0, 0))
    else:
        kernel = _encoder_kernel_mxu
        w_arg = w2d                                                                 # [N, W]
        w_spec = pl.BlockSpec((N, W), lambda i: (0, 0))

    return pl.pallas_call(
        kernel,
        out_shape=jax.ShapeDtypeStruct((B, N, L), out_dtype),
        grid=(grid_l,),
        in_specs=[
            pl.BlockSpec((B, W, tile_l), lambda i: (0, 0, i)),   # streamed taps
            w_spec,                                              # resident weight
        ],
        out_specs=pl.BlockSpec((B, N, tile_l), lambda i: (0, 0, i)),
        compiler_params=pltpu.CompilerParams(
            dimension_semantics=("parallel",),                   # 2 TCs on v7x / megacore
            vmem_limit_bytes=vmem_limit,
        ),
    )(taps, w_arg)


# ----------------------------- demo / check ---------------------------------


if __name__ == "__main__":
    enc = jax.jit(encoder_forward, static_argnames=("W", "out_dtype"))

    def reference(mixture, conv_weight, W):
        stride = W // 2
        B, T = mixture.shape
        N = conv_weight.shape[0]
        L = (T - W) // stride + 1
        idx = jnp.arange(L)[:, None] * stride + jnp.arange(W)[None, :]
        return jnp.maximum(
            jnp.einsum("blw,nw->bnl", mixture[:, idx], conv_weight.reshape(N, W)), 0.0
        )

    key = jax.random.PRNGKey(0)
    k1, k2, k3, k4 = jax.random.split(key, 4)

    # Case 1: module defaults (W=2, N=64) -> small-W VPU path, exact f32 output.
    B, T, W, N = 2, 16, 2, 64
    mix = jax.random.normal(k1, (B, T), dtype=jnp.float32)
    wgt = jax.random.normal(k2, (N, 1, W), dtype=jnp.float32) * 0.1
    out = jax.block_until_ready(enc(mix, wgt, W=W, out_dtype=jnp.float32))
    ref = reference(mix, wgt, W)
    assert out.shape == ref.shape and out.dtype == jnp.float32, (out.shape, out.dtype)
    assert jnp.allclose(out, ref, atol=1e-5, rtol=1e-5)

    # Case 2: wider kernel (W=8) -> MXU path, default bf16 output (f32 accumulation).
    B, T, W, N = 2, 128, 8, 64
    mix = jax.random.normal(k3, (B, T), dtype=jnp.float32)
    wgt = jax.random.normal(k4, (N, 1, W), dtype=jnp.float32) * 0.1
    out = jax.block_until_ready(enc(mix, wgt, W=W))
    ref = reference(mix, wgt, W)
    assert out.shape == ref.shape and out.dtype == jnp.bfloat16, (out.shape, out.dtype)
    assert jnp.allclose(out.astype(jnp.float32), ref, atol=3e-2, rtol=3e-2)

    print("KERNEL_OK")
</pallas_src>

<mosaic_0001>
module attributes {stable_mosaic.version = 11 : i64} {
  func.func @_encoder_kernel_vpu(%arg0: i32, %arg1: memref<2x2x15xf32, #tpu.memory_space<vmem>>, %arg2: memref<2x64x1xf32, #tpu.memory_space<vmem>>, %arg3: memref<2x64x15xf32, #tpu.memory_space<vmem>>) attributes {dimension_semantics = [#tpu.dimension_semantics<parallel>], iteration_bounds = array<i64: 1>, scalar_prefetch = 0 : i64, scratch_operands = 0 : i64, tpu.core_type = #tpu.core_type<tc>, window_params = [{transform_indices = @transform_0, window_bounds = array<i64: 2, 2, 15>}, {pipeline_mode = #tpu.pipeline_mode<synchronous>, transform_indices = @transform_1, window_bounds = array<i64: 2, 64, 1>}, {transform_indices = @transform_2, window_bounds = array<i64: 2, 64, 15>}]} {
    %c0 = arith.constant 0 : index
    %c0_0 = arith.constant 0 : index
    %c0_1 = arith.constant 0 : index
    %0 = vector.load %arg2[%c0, %c0_0, %c0_1] : memref<2x64x1xf32, #tpu.memory_space<vmem>>, vector<2x64x1xf32>
    %1 = vector.extract_strided_slice %0 {offsets = [0, 0, 0], sizes = [1, 64, 1], strides = [1, 1, 1]} : vector<2x64x1xf32> to vector<1x64x1xf32>
    %2 = vector.shape_cast %1 : vector<1x64x1xf32> to vector<64x1xf32>
    %3 = vector.shape_cast %2 : vector<64x1xf32> to vector<1x64x1xf32>
    %c0_2 = arith.constant 0 : index
    %c0_3 = arith.constant 0 : index
    %c0_4 = arith.constant 0 : index
    %4 = vector.load %arg1[%c0_2, %c0_3, %c0_4] : memref<2x2x15xf32, #tpu.memory_space<vmem>>, vector<2x1x15xf32>
    %5 = vector.shape_cast %4 : vector<2x1x15xf32> to vector<2x15xf32>
    %6 = vector.shape_cast %5 : vector<2x15xf32> to vector<2x1x15xf32>
    %7 = vector.broadcast %3 : vector<1x64x1xf32> to vector<2x64x15xf32>
    %8 = vector.broadcast %6 : vector<2x1x15xf32> to vector<2x64x15xf32>
    %9 = arith.mulf %7, %8 : vector<2x64x15xf32>
    %10 = vector.extract_strided_slice %0 {offsets = [1, 0, 0], sizes = [1, 64, 1], strides = [1, 1, 1]} : vector<2x64x1xf32> to vector<1x64x1xf32>
    %11 = vector.shape_cast %10 : vector<1x64x1xf32> to vector<64x1xf32>
    %12 = vector.shape_cast %11 : vector<64x1xf32> to vector<1x64x1xf32>
    %c0_5 = arith.constant 0 : index
    %c1 = arith.constant 1 : index
    %c0_6 = arith.constant 0 : index
    %13 = vector.load %arg1[%c0_5, %c1, %c0_6] : memref<2x2x15xf32, #tpu.memory_space<vmem>>, vector<2x1x15xf32>
    %14 = vector.shape_cast %13 : vector<2x1x15xf32> to vector<2x15xf32>
    %15 = vector.shape_cast %14 : vector<2x15xf32> to vector<2x1x15xf32>
    %16 = vector.broadcast %12 : vector<1x64x1xf32> to vector<2x64x15xf32>
    %17 = vector.broadcast %15 : vector<2x1x15xf32> to vector<2x64x15xf32>
    %18 = arith.mulf %16, %17 : vector<2x64x15xf32>
    %19 = arith.addf %9, %18 : vector<2x64x15xf32>
    %cst = arith.constant 0.000000e+00 : f32
    %20 = vector.broadcast %cst : f32 to vector<2x64x15xf32>
    %21 = arith.maximumf %19, %20 : vector<2x64x15xf32>
    %c0_7 = arith.constant 0 : index
    %c0_8 = arith.constant 0 : index
    %c0_9 = arith.constant 0 : index
    %22 = vector.load %arg3[%c0_7, %c0_8, %c0_9] : memref<2x64x15xf32, #tpu.memory_space<vmem>>, vector<2x64x15xf32>
    tpu.vector_store %arg3[%c0_7, %c0_8, %c0_9], %21 {strides = array<i32>} : memref<2x64x15xf32, #tpu.memory_space<vmem>>, vector<2x64x15xf32>,
    return
  }
  func.func @transform_0(%arg0: i32) -> (i32, i32, i32) {
    %c0_i32 = arith.constant 0 : i32
    %c0_i32_0 = arith.constant 0 : i32
    %c0_i32_1 = arith.constant 0 : i32
    return %c0_i32, %c0_i32_0, %arg0 : i32, i32, i32
  }
  func.func @transform_1(%arg0: i32) -> (i32, i32, i32) {
    %c0_i32 = arith.constant 0 : i32
    %c0_i32_0 = arith.constant 0 : i32
    %c0_i32_1 = arith.constant 0 : i32
    %c0_i32_2 = arith.constant 0 : i32
    return %c0_i32, %c0_i32_0, %c0_i32_1 : i32, i32, i32
  }
  func.func @transform_2(%arg0: i32) -> (i32, i32, i32) {
    %c0_i32 = arith.constant 0 : i32
    %c0_i32_0 = arith.constant 0 : i32
    %c0_i32_1 = arith.constant 0 : i32
    return %c0_i32, %c0_i32_0, %arg0 : i32, i32, i32
  }
}

</mosaic_0001>

<bundles_post_ra>
// kernel: encoder_forward.1
= control target key start
LH: loop header
LB: loop body
LE: loop exit
PB: predicated region body
PF: predicated region fallthrough
CT: control target
= control target key end

     0   :  { %v219_v0 = vmov 0   ;;  %vm191_vm0 = vcmask 121856   ;;  %s387_s1 = inlined_call_operand.vmem [shape: f32[2,64,1], index: 1, kind: input, shape index: {}]   ;;  %s388_s0 = inlined_call_operand.vmem [shape: f32[2,2,15], index: 0, kind: input, shape index: {}]   ;;  %s389_s2 = inlined_call_operand.vmem [shape: f32[2,64,15], index: 2, kind: output, shape index: {}]  }
   0x1   :  { %218 = vset.pattern.permute.xlu1 %v219_v0  ;;  %217 = vset.pattern.permute.xlu0 %v219_v0  ;;  %v13_v1 = vld [vmem:[%s387_s1 + $0x10] sm:$0xff]  ;;  %v11_v2 = vld [vmem:[%s387_s1] sm:$0xff]  ;;  %v14_v3 = vld [vmem:[%s387_s1 + $0x18] sm:$0xff] }
   0x2   :  { %41 = vperm.xlu1 %218, %v13_v1   ;;  %31 = vperm.xlu0 %217, %v11_v2   ;;  %v12_v4 = vld [vmem:[%s387_s1 + $0x8] sm:$0xff]  ;;  %v15_v6 = vld [vmem:[%s387_s1 + $0x20] sm:$0xff]  ;;  %v18_v7 = vld [vmem:[%s387_s1 + $0x38] sm:$0xff] }
   0x3   :  { %v16_v5 = vld [vmem:[%s387_s1 + $0x28] sm:$0xff]  ;;  %v17_v8 = vld [vmem:[%s387_s1 + $0x30] sm:$0xff]  ;;  %v19_v10 = vld [vmem:[%s387_s1 + $0x40] sm:$0xff] }
   0x4   :  { %v20_v9 = vld [vmem:[%s387_s1 + $0x48] sm:$0xff]  ;;  %v22_v11 = vld [vmem:[%s387_s1 + $0x58] sm:$0xff]  ;;  %v21_v12 = vld [vmem:[%s387_s1 + $0x50] sm:$0xff] }
   0x5   :  { %v24_v13 = vld [vmem:[%s387_s1 + $0x68] sm:$0xff]  ;;  %v23_v14 = vld [vmem:[%s387_s1 + $0x60] sm:$0xff]  ;;  %v26_v15 = vld [vmem:[%s387_s1 + $0x78] sm:$0xff] }
   0x6   :  { %46 = vperm.xlu1 %218, %v14_v3   ;;  %36 = vperm.xlu0 %217, %v12_v4   ;;  %v25_v16 = vld [vmem:[%s387_s1 + $0x70] sm:$0xff]  ;;  %v212_v25 = vld [vmem:[%s388_s0] ss:$0 sm:$0xff]  ;;  %v213_v26 = vld [vmem:[%s388_s0 + $0x2] ss:$0 sm:$0xff] }
   0x7   :  { %v296_v27 = vld [vmem:[%s388_s0 + $0x1] ss:$0 sm:$0xff]  ;;  %v301_v28 = vld [vmem:[%s388_s0 + $0x3] ss:$0 sm:$0xff] }
   0xa   :  { %56 = vperm.xlu1 %218, %v16_v5   ;;  %51 = vperm.xlu0 %217, %v15_v6  }
   0xe   :  { %66 = vperm.xlu1 %218, %v18_v7   ;;  %61 = vperm.xlu0 %217, %v17_v8  }
  0x12   :  { %102 = vperm.xlu1 %218, %v20_v9   ;;  %97 = vperm.xlu0 %217, %v19_v10  }
  0x16   :  { %112 = vperm.xlu1 %218, %v22_v11   ;;  %107 = vperm.xlu0 %217, %v21_v12  }
  0x1a   :  { %122 = vperm.xlu1 %218, %v24_v13   ;;  %117 = vperm.xlu0 %217, %v23_v14  }
  0x1e   :  { %132 = vperm.xlu1 %218, %v26_v15   ;;  %127 = vperm.xlu0 %217, %v25_v16  }
  0x7d   :  { %v42_v17 = vpop.permute.xlu1 %41  ;;  %v32_v18 = vpop.permute.xlu0 %31 }
  0x7e   :  { %v77_v29 = vmul.f32 %v212_v25, %v32_v18  ;;  %v85_v30 = vmul.f32 %v213_v26, %v32_v18  ;;  %v79_v43 = vmul.f32 %v212_v25, %v42_v17  ;;  %v87_v44 = vmul.f32 %v213_v26, %v42_v17 }
  0x81   :  { %v47_v19 = vpop.permute.xlu1 %46  ;;  %v37_v20 = vpop.permute.xlu0 %36 }
  0x82   :  { %v78_v31 = vmul.f32 %v212_v25, %v37_v20  ;;  %v86_v32 = vmul.f32 %v213_v26, %v37_v20  ;;  %v80_v45 = vmul.f32 %v212_v25, %v47_v19  ;;  %v88_v46 = vmul.f32 %v213_v26, %v47_v19 }
  0x85   :  { %v57_v21 = vpop.permute.xlu1 %56  ;;  %v52_v22 = vpop.permute.xlu0 %51 }
  0x86   :  { %v82_v57 = vmul.f32 %v212_v25, %v57_v21  ;;  %v90_v58 = vmul.f32 %v213_v26, %v57_v21  ;;  %v81_v59 = vmul.f32 %v212_v25, %v52_v22  ;;  %v89_v60 = vmul.f32 %v213_v26, %v52_v22 }
  0x89   :  { %v283_v23 = vpop.permute.xlu1 %66  ;;  %v285_v24 = vpop.permute.xlu0 %61 }
  0x8a   :  { %v84_v15 = vmul.f32 %v212_v25, %v283_v23  ;;  %v92_v16 = vmul.f32 %v213_v26, %v283_v23  ;;  %v83_v17 = vmul.f32 %v212_v25, %v285_v24  ;;  %v91_v18 = vmul.f32 %v213_v26, %v285_v24 }
  0x8d   :  { %v103_v33 = vpop.permute.xlu1 %102  ;;  %v98_v34 = vpop.permute.xlu0 %97 }
  0x8e   :  { %v144_v35 = vmul.f32 %v296_v27, %v103_v33  ;;  %v152_v36 = vmul.f32 %v301_v28, %v103_v33  ;;  %v143_v37 = vmul.f32 %v296_v27, %v98_v34  ;;  %v151_v38 = vmul.f32 %v301_v28, %v98_v34 }
  0x90   :  { %v160_v39 = vadd.f32 %v144_v35, %v78_v31  ;;  %v168_v40 = vadd.f32 %v152_v36, %v86_v32  ;;  %v159_v41 = vadd.f32 %v143_v37, %v77_v29  ;;  %v167_v42 = vadd.f32 %v151_v38, %v85_v30 }
  0x91   :  { %v113_v47 = vpop.permute.xlu1 %112  ;;  %v108_v48 = vpop.permute.xlu0 %107 }
  0x92   :  { %v176_v49 = vmax.f32 %v160_v39, 0.0  ;;  %v184_v50 = vmax.f32 %v168_v40, 0.0  ;;  %v175_v51 = vmax.f32 %v159_v41, 0.0  ;;  %v183_v52 = vmax.f32 %v167_v42, 0.0 }
  0x93   :  { %v146_v53 = vmul.f32 %v296_v27, %v113_v47  ;;  %v154_v54 = vmul.f32 %v301_v28, %v113_v47  ;;  %v145_v55 = vmul.f32 %v296_v27, %v108_v48  ;;  %v153_v56 = vmul.f32 %v301_v28, %v108_v48 }
  0x94   :  { %193 = vst.msk [vmem:[%s389_s2 + $0x8] sm:$0xff] %vm191_vm0, %v176_v49  ;;  %201 = vst.msk [vmem:[%s389_s2 + $0x48] sm:$0xff] %vm191_vm0, %v184_v50 }
  0x95   :  { %192 = vst.msk [vmem:[%s389_s2] sm:$0xff] %vm191_vm0, %v175_v51  ;;  %200 = vst.msk [vmem:[%s389_s2 + $0x40] sm:$0xff] %vm191_vm0, %v183_v52  ;;  %v162_v61 = vadd.f32 %v146_v53, %v80_v45  ;;  %v170_v62 = vadd.f32 %v154_v54, %v88_v46  ;;  %v161_v63 = vadd.f32 %v145_v55, %v79_v43  ;;  %v123_v1 = vpop.permute.xlu1 %122  ;;  %v118_v2 = vpop.permute.xlu0 %117 }
  0x96   :  { %v169_v0 = vadd.f32 %v153_v56, %v87_v44  ;;  %v148_v3 = vmul.f32 %v296_v27, %v123_v1  ;;  %v156_v4 = vmul.f32 %v301_v28, %v123_v1  ;;  %v147_v5 = vmul.f32 %v296_v27, %v118_v2 }
  0x97   :  { %v155_v6 = vmul.f32 %v301_v28, %v118_v2  ;;  %v178_v7 = vmax.f32 %v162_v61, 0.0  ;;  %v186_v8 = vmax.f32 %v170_v62, 0.0  ;;  %v177_v9 = vmax.f32 %v161_v63, 0.0 }
  0x98   :  { %v185_v10 = vmax.f32 %v169_v0, 0.0  ;;  %v164_v11 = vadd.f32 %v148_v3, %v82_v57  ;;  %v172_v12 = vadd.f32 %v156_v4, %v90_v58  ;;  %v163_v13 = vadd.f32 %v147_v5, %v81_v59 }
  0x99   :  { %v171_v14 = vadd.f32 %v155_v6, %v89_v60  ;;  %195 = vst.msk [vmem:[%s389_s2 + $0x18] sm:$0xff] %vm191_vm0, %v178_v7  ;;  %203 = vst.msk [vmem:[%s389_s2 + $0x58] sm:$0xff] %vm191_vm0, %v186_v8  ;;  %v133_v19 = vpop.permute.xlu1 %132  ;;  %v128_v20 = vpop.permute.xlu0 %127 }
  0x9a   :  { %194 = vst.msk [vmem:[%s389_s2 + $0x10] sm:$0xff] %vm191_vm0, %v177_v9  ;;  %202 = vst.msk [vmem:[%s389_s2 + $0x50] sm:$0xff] %vm191_vm0, %v185_v10  ;;  %v180_v21 = vmax.f32 %v164_v11, 0.0  ;;  %v188_v22 = vmax.f32 %v172_v12, 0.0  ;;  %v179_v23 = vmax.f32 %v163_v13, 0.0  ;;  %v150_v25 = vmul.f32 %v296_v27, %v133_v19 }
  0x9b   :  { %v187_v24 = vmax.f32 %v171_v14, 0.0  ;;  %v158_v26 = vmul.f32 %v301_v28, %v133_v19  ;;  %v149_v29 = vmul.f32 %v296_v27, %v128_v20  ;;  %v157_v30 = vmul.f32 %v301_v28, %v128_v20 }
  0x9c   :  { %197 = vst.msk [vmem:[%s389_s2 + $0x28] sm:$0xff] %vm191_vm0, %v180_v21  ;;  %205 = vst.msk [vmem:[%s389_s2 + $0x68] sm:$0xff] %vm191_vm0, %v188_v22  ;;  %v166_v27 = vadd.f32 %v150_v25, %v84_v15 }
  0x9d   :  { %196 = vst.msk [vmem:[%s389_s2 + $0x20] sm:$0xff] %vm191_vm0, %v179_v23  ;;  %204 = vst.msk [vmem:[%s389_s2 + $0x60] sm:$0xff] %vm191_vm0, %v187_v24  ;;  %v174_v28 = vadd.f32 %v158_v26, %v92_v16  ;;  %v165_v31 = vadd.f32 %v149_v29, %v83_v17  ;;  %v173_v32 = vadd.f32 %v157_v30, %v91_v18 }
  0x9e   :  { %v182_v33 = vmax.f32 %v166_v27, 0.0 }
  0x9f   :  { %v190_v34 = vmax.f32 %v174_v28, 0.0  ;;  %v181_v35 = vmax.f32 %v165_v31, 0.0  ;;  %v189_v36 = vmax.f32 %v173_v32, 0.0 }
  0xa0   :  { %199 = vst.msk [vmem:[%s389_s2 + $0x38] sm:$0xff] %vm191_vm0, %v182_v33 }
  0xa1   :  { %207 = vst.msk [vmem:[%s389_s2 + $0x78] sm:$0xff] %vm191_vm0, %v190_v34  ;;  %198 = vst.msk [vmem:[%s389_s2 + $0x30] sm:$0xff] %vm191_vm0, %v181_v35 }
  0xa2   :  { %206 = vst.msk [vmem:[%s389_s2 + $0x70] sm:$0xff] %vm191_vm0, %v189_v36 }

</bundles_post_ra>
